<compile_context>
chip_gen: v5e
topology: v5e:2x2
jax: 0.10.0
libtpu: 0.0.40
codegen_flags: <defaults>
</compile_context>

<pallas_src>
import functools

import jax
import jax.numpy as jnp
from jax import lax
from jax.experimental import pallas as pl
from jax.experimental.pallas import tpu as pltpu


def _round_up(n, m):
    return ((n + m - 1) // m) * m


def _device_kind():
    try:
        return jax.devices()[0].device_kind.lower()
    except Exception:
        return ""


def _sigmoid(z):
    # sigmoid(z) == 0.5 * tanh(0.5 * z) + 0.5 : a single native EUP op per value.
    # Python-float constants are weakly typed, so bf16 inputs stay bf16.
    return 0.5 * jnp.tanh(0.5 * z) + 0.5


def ann_kernel(x_ref, w1_ref, b1_ref, w2_ref, b2_ref, o_ref, *, act_dtype):
    # x_ref : (TILE_B, D)   streaming dtype (f32 or bf16)
    # w1_ref: (H, D)        streaming dtype (matches x for the MXU)
    # b1_ref: (H, 1)        f32
    # w2_ref: (H, 1)        act_dtype
    # b2_ref: (1, 1)        f32 scalar in SMEM
    # o_ref : (1, TILE_B)   f32  (batch along lanes -> lane-dense, unmasked store)

    # Layer 1: W1 @ x^T -> (H, TILE_B); MXU with f32 accumulation.
    logits1 = lax.dot_general(
        w1_ref[...],
        x_ref[...],
        dimension_numbers=(((1,), (1,)), ((), ())),
        preferred_element_type=jnp.float32,
    )
    z1 = (logits1 + b1_ref[...]).astype(act_dtype)     # bias add in f32, then cast
    h_t = _sigmoid(z1)                                 # (H, TILE_B), act_dtype (EUP)

    # Layer 2: VPU multiply (act_dtype) + sublane reduce with f32 accumulation.
    y_t = jnp.sum(h_t * w2_ref[...], axis=0, keepdims=True, dtype=jnp.float32)
    o_ref[...] = _sigmoid(y_t + b2_ref[0, 0]).astype(o_ref.dtype)


def ann_forward(x, w1, b1, w2, b2, *, tile_b=8192, act_dtype=None):
    """Forward pass of ANNModel.

    x : (B, D) -- streamed in its given dtype (cast to bf16 at the producer for ~2x
        less HBM traffic on v5e/v6e; this wrapper never re-casts x).
    w1: (H, D), b1: (H,)   -- nn.Linear(input_dim, hidden_dim) storage layout
    w2: (1, H), b2: (1,)   -- nn.Linear(hidden_dim, 1) storage layout
    Returns (B, 1) float32.
    """
    B, D = x.shape
    H = w1.shape[0]
    kind = _device_kind()

    # Element-wise dtype: bf16 activations only where the VPU/EUP are bf16-capable
    # (v6e / v7x) and the input itself is already bf16; otherwise stay f32.
    if act_dtype is None:
        bf16_chip = ("v6" in kind) or ("v7" in kind)
        act_dtype = jnp.bfloat16 if (x.dtype == jnp.bfloat16 and bf16_chip) else jnp.float32

    # Tile sizing: multiples of 128 (lane-dense output, bf16 sublane packing).
    #  * don't over-tile tiny batches,
    #  * on v7x cap at ceil(B / 2 TCs) so the "parallel" batch axis keeps both cores busy.
    num_tc = 2 if "v7" in kind else 1
    cap = _round_up(pl.cdiv(max(B, 1), num_tc), 128)
    tile_b = max(128, min(_round_up(tile_b, 128), cap))

    grid_b = pl.cdiv(B, tile_b)
    b_pad = grid_b * tile_b          # output padded -> every store is a full tile
                                     # x is NOT padded: boundary block DMA is clamped.

    w1_c = w1.astype(x.dtype)                       # tiny, one-time cast (MXU operand)
    b1_c = b1.reshape(H, 1).astype(jnp.float32)
    w2_c = w2.reshape(H, 1).astype(act_dtype)
    b2_c = b2.reshape(1, 1).astype(jnp.float32)

    bytes_accessed = (
        x.size * x.dtype.itemsize                      # x stream (dominant)
        + b_pad * 4                                    # output row
        + (w1_c.size * w1_c.dtype.itemsize) + (H + H + 1) * 4
    )

    out = pl.pallas_call(
        functools.partial(ann_kernel, act_dtype=act_dtype),
        out_shape=jax.ShapeDtypeStruct((1, b_pad), jnp.float32),
        grid=(grid_b,),
        in_specs=[
            pl.BlockSpec((tile_b, D), lambda i: (i, 0)),        # x: streamed over batch
            pl.BlockSpec((H, D), lambda i: (0, 0)),             # W1: resident
            pl.BlockSpec((H, 1), lambda i: (0, 0)),             # b1: resident
            pl.BlockSpec((H, 1), lambda i: (0, 0)),             # w2: resident
            pl.BlockSpec(memory_space=pltpu.MemorySpace.SMEM),  # b2: scalar in SMEM
        ],
        out_specs=pl.BlockSpec((1, tile_b), lambda i: (0, i)),  # lane-dense output row
        compiler_params=pltpu.CompilerParams(
            dimension_semantics=("parallel",),                  # shard batch over v7x TCs
        ),
        cost_estimate=pl.CostEstimate(
            flops=2 * B * H * (D + 2),
            transcendentals=B * (H + 1),
            bytes_accessed=bytes_accessed,
        ),
    )(x, w1_c, b1_c, w2_c, b2_c)

    return out.reshape(b_pad, 1)[:B]


def init_params(key, input_dim, hidden_dim):
    """Deterministic synthetic parameters (shapes match nn.Linear storage)."""
    k1, k2, k3, k4 = jax.random.split(key, 4)
    w1 = jax.random.normal(k1, (hidden_dim, input_dim), jnp.float32) * 0.1
    b1 = jax.random.normal(k2, (hidden_dim,), jnp.float32) * 0.1
    w2 = jax.random.normal(k3, (1, hidden_dim), jnp.float32) * 0.1
    b2 = jax.random.normal(k4, (1,), jnp.float32) * 0.1
    return w1, b1, w2, b2


def reference_forward(x, w1, b1, w2, b2):
    h = jax.nn.sigmoid(x @ w1.T + b1)
    return jax.nn.sigmoid(h @ w2.T + b2)


if __name__ == "__main__":
    key = jax.random.PRNGKey(0)
    k_x1, k_x2, k_p = jax.random.split(key, 3)

    input_dim = 16   # synthetic stand-in for the CSV feature count
    hidden_dim = 32
    w1, b1, w2, b2 = init_params(k_p, input_dim, hidden_dim)

    # 1) Small batch, f32 streaming + f32 activations (faithful to the PyTorch f32 forward).
    batch = 8
    x_small = jax.random.normal(k_x1, (batch, input_dim), jnp.float32)
    out_small = jax.block_until_ready(
        ann_forward(x_small, w1, b1, w2, b2, act_dtype=jnp.float32)
    )
    ref_small = reference_forward(x_small, w1, b1, w2, b2)
    assert out_small.shape == (batch, 1)
    assert jnp.allclose(out_small, ref_small, atol=1e-5, rtol=1e-5), "f32 mismatch"

    # 2) Larger ragged batch streamed in bf16 ("cast at the producer"), exercising the
    #    un-padded boundary-tile path and bf16 activations on v6e/v7x (f32 on v5e).
    batch_big = 1000
    x_big = jax.random.normal(k_x2, (batch_big, input_dim), jnp.float32)
    x_big_bf16 = x_big.astype(jnp.bfloat16)   # producer-side cast, outside the kernel path
    out_big = jax.block_until_ready(ann_forward(x_big_bf16, w1, b1, w2, b2))
    ref_big = reference_forward(x_big, w1, b1, w2, b2)
    assert out_big.shape == (batch_big, 1)
    assert jnp.allclose(out_big, ref_big, atol=1e-2, rtol=1e-2), "bf16 mismatch"

    print("KERNEL_OK")
</pallas_src>

<mosaic_0001>
module attributes {stable_mosaic.version = 11 : i64} {
  func.func @ann_kernel(%arg0: i32, %arg1: memref<128x16xf32, #tpu.memory_space<vmem>>, %arg2: memref<32x16xf32, #tpu.memory_space<vmem>>, %arg3: memref<32x1xf32, #tpu.memory_space<vmem>>, %arg4: memref<32x1xf32, #tpu.memory_space<vmem>>, %arg5: memref<1x1xf32, #tpu.memory_space<smem>>, %arg6: memref<1x128xf32, #tpu.memory_space<vmem>>) attributes {dimension_semantics = [#tpu.dimension_semantics<parallel>], iteration_bounds = array<i64: 1>, scalar_prefetch = 0 : i64, scratch_operands = 0 : i64, tpu.core_type = #tpu.core_type<tc>, window_params = [{transform_indices = @transform_0, window_bounds = array<i64: 128, 16>}, {pipeline_mode = #tpu.pipeline_mode<synchronous>, transform_indices = @transform_1, window_bounds = array<i64: 32, 16>}, {pipeline_mode = #tpu.pipeline_mode<synchronous>, transform_indices = @transform_2, window_bounds = array<i64: 32, 1>}, {pipeline_mode = #tpu.pipeline_mode<synchronous>, transform_indices = @transform_3, window_bounds = array<i64: 32, 1>}, {transform_indices = @transform_4, window_bounds = array<i64: 1, 1>}, {transform_indices = @transform_5, window_bounds = array<i64: 1, 128>}]} {
    %c0 = arith.constant 0 : index
    %c0_0 = arith.constant 0 : index
    %0 = vector.load %arg2[%c0, %c0_0] : memref<32x16xf32, #tpu.memory_space<vmem>>, vector<32x16xf32>
    %c0_1 = arith.constant 0 : index
    %c0_2 = arith.constant 0 : index
    %1 = vector.load %arg1[%c0_1, %c0_2] : memref<128x16xf32, #tpu.memory_space<vmem>>, vector<128x16xf32>
    %cst = arith.constant dense<0.000000e+00> : vector<32x128xf32>
    %2 = tpu.matmul %0, %1, %cst {dimension_numbers = #tpu.dot_dimension_numbers<[1], [1], [0], [0], [0, 0, 1, 0], [], []>} : vector<32x16xf32>, vector<128x16xf32>, vector<32x128xf32> -> vector<32x128xf32>
    %c0_3 = arith.constant 0 : index
    %c0_4 = arith.constant 0 : index
    %3 = vector.load %arg3[%c0_3, %c0_4] : memref<32x1xf32, #tpu.memory_space<vmem>>, vector<32x1xf32>
    %4 = vector.broadcast %3 : vector<32x1xf32> to vector<32x128xf32>
    %5 = arith.addf %2, %4 : vector<32x128xf32>
    %cst_5 = arith.constant 5.000000e-01 : f32
    %6 = vector.broadcast %cst_5 : f32 to vector<32x128xf32>
    %7 = arith.mulf %6, %5 : vector<32x128xf32>
    %8 = math.tanh %7 : vector<32x128xf32>
    %cst_6 = arith.constant 5.000000e-01 : f32
    %9 = vector.broadcast %cst_6 : f32 to vector<32x128xf32>
    %10 = arith.mulf %9, %8 : vector<32x128xf32>
    %cst_7 = arith.constant 5.000000e-01 : f32
    %11 = vector.broadcast %cst_7 : f32 to vector<32x128xf32>
    %12 = arith.addf %10, %11 : vector<32x128xf32>
    %c0_8 = arith.constant 0 : index
    %c0_9 = arith.constant 0 : index
    %13 = vector.load %arg4[%c0_8, %c0_9] : memref<32x1xf32, #tpu.memory_space<vmem>>, vector<32x1xf32>
    %14 = vector.broadcast %13 : vector<32x1xf32> to vector<32x128xf32>
    %15 = arith.mulf %12, %14 : vector<32x128xf32>
    %cst_10 = arith.constant dense<0.000000e+00> : vector<128xf32>
    %16 = vector.multi_reduction <add>, %15, %cst_10 [0] : vector<32x128xf32> to vector<128xf32>
    %17 = vector.shape_cast %16 : vector<128xf32> to vector<1x128xf32>
    %c0_11 = arith.constant 0 : index
    %c0_12 = arith.constant 0 : index
    %18 = memref.load %arg5[%c0_11, %c0_12] : memref<1x1xf32, #tpu.memory_space<smem>>
    %19 = vector.broadcast %18 : f32 to vector<1x128xf32>
    %20 = arith.addf %17, %19 : vector<1x128xf32>
    %cst_13 = arith.constant 5.000000e-01 : f32
    %21 = vector.broadcast %cst_13 : f32 to vector<1x128xf32>
    %22 = arith.mulf %21, %20 : vector<1x128xf32>
    %23 = math.tanh %22 : vector<1x128xf32>
    %cst_14 = arith.constant 5.000000e-01 : f32
    %24 = vector.broadcast %cst_14 : f32 to vector<1x128xf32>
    %25 = arith.mulf %24, %23 : vector<1x128xf32>
    %cst_15 = arith.constant 5.000000e-01 : f32
    %26 = vector.broadcast %cst_15 : f32 to vector<1x128xf32>
    %27 = arith.addf %25, %26 : vector<1x128xf32>
    %c0_16 = arith.constant 0 : index
    %c0_17 = arith.constant 0 : index
    %28 = vector.load %arg6[%c0_16, %c0_17] : memref<1x128xf32, #tpu.memory_space<vmem>>, vector<1x128xf32>
    tpu.vector_store %arg6[%c0_16, %c0_17], %27 {strides = array<i32>} : memref<1x128xf32, #tpu.memory_space<vmem>>, vector<1x128xf32>,
    return
  }
  func.func @transform_0(%arg0: i32) -> (i32, i32) {
    %c0_i32 = arith.constant 0 : i32
    %c0_i32_0 = arith.constant 0 : i32
    return %arg0, %c0_i32 : i32, i32
  }
  func.func @transform_1(%arg0: i32) -> (i32, i32) {
    %c0_i32 = arith.constant 0 : i32
    %c0_i32_0 = arith.constant 0 : i32
    %c0_i32_1 = arith.constant 0 : i32
    return %c0_i32, %c0_i32_0 : i32, i32
  }
  func.func @transform_2(%arg0: i32) -> (i32, i32) {
    %c0_i32 = arith.constant 0 : i32
    %c0_i32_0 = arith.constant 0 : i32
    %c0_i32_1 = arith.constant 0 : i32
    return %c0_i32, %c0_i32_0 : i32, i32
  }
  func.func @transform_3(%arg0: i32) -> (i32, i32) {
    %c0_i32 = arith.constant 0 : i32
    %c0_i32_0 = arith.constant 0 : i32
    %c0_i32_1 = arith.constant 0 : i32
    return %c0_i32, %c0_i32_0 : i32, i32
  }
  func.func @transform_4(%arg0: i32) -> (i32, i32) {
    %c0_i32 = arith.constant 0 : i32
    %c0_i32_0 = arith.constant 0 : i32
    %c0_i32_1 = arith.constant 0 : i32
    return %c0_i32, %c0_i32_0 : i32, i32
  }
  func.func @transform_5(%arg0: i32) -> (i32, i32) {
    %c0_i32 = arith.constant 0 : i32
    %c0_i32_0 = arith.constant 0 : i32
    return %c0_i32, %arg0 : i32, i32
  }
}

</mosaic_0001>

<bundles_post_ra>
// kernel: tpu_custom_call.1
= control target key start
LH: loop header
LB: loop body
LE: loop exit
PB: predicated region body
PF: predicated region fallthrough
CT: control target
= control target key end

     0   :  { %vm66_vm0 = vcmask 130048   ;;  %s532_s0 = inlined_call_operand.vmem [shape: f32[8,16], index: 0, kind: input, shape index: {}]   ;;  %s533_s1 = inlined_call_operand.vmem [shape: f32[32,16], index: 1, kind: input, shape index: {}]   ;;  %s534_s2 = inlined_call_operand.vmem [shape: f32[32,1], index: 2, kind: input, shape index: {}]   ;;  %s535_s3 = inlined_call_operand.vmem [shape: f32[32,1], index: 3, kind: input, shape index: {}]   ;;  %s536_s4 = inlined_call_operand.<no memory space> [shape: f32[1,1], index: 4, kind: input, shape index: {}]   ;;  %s537_s5 = inlined_call_operand.hbm [shape: f32[1,128], index: 5, kind: output, shape index: {}]  }
   0x1   :  { %v41_v0 = vld [vmem:[%s532_s0 + $0x78] sm:$0xff]  ;;  %v40_v1 = vld [vmem:[%s532_s0 + $0x70] sm:$0xff] }
   0x2   :  { %233 = vmatpush.xpose.msk.msra.mxu0 %vm66_vm0, %v41_v0  ;;  %253 = vmatpush.xpose.msk.msra.mxu1 %vm66_vm0, %v41_v0 }
   0x3   :  { %254 = vmatpush.xpose.msk.msra.mxu2 %vm66_vm0, %v41_v0  ;;  %255 = vmatpush.xpose.msk.msra.mxu3 %vm66_vm0, %v41_v0 }
   0x4   :  { %11 = vsyncpa [#allocation4], 0  ;;  %v39_v2 = vld [vmem:[%s532_s0 + $0x68] sm:$0xff]  ;;  %v38_v3 = vld [vmem:[%s532_s0 + $0x60] sm:$0xff]  ;;  %v342_v8 = vmov 0   ;;  %s343_s22 = smov [#allocation3]  }
   0x5   :  { %v37_v4 = vld [vmem:[%s532_s0 + $0x58] sm:$0xff]  ;;  %v36_v5 = vld [vmem:[%s532_s0 + $0x50] sm:$0xff]  ;;  %v35_v6 = vld [vmem:[%s532_s0 + $0x48] sm:$0xff]  ;;  %303 = vset.pattern.permute.xlu0 %v342_v8  ;;  %304 = vset.pattern.permute.xlu1 %v342_v8  ;;  %s222_s23 = sshll.u32 %s343_s22, 4  ;;  %s224_s25 = sshll.u32 %s537_s5, 4  ;;  %s223_s23 = int_to_ptr.vmem [resolvable:$true] %s222_s23  ;;  %s225_s25 = int_to_ptr.hbm [resolvable:$true] %s224_s25 }
   0x6   :  { %234 = vmatpush.xpose.msk.msra.mxu0 %vm66_vm0, %v40_v1  ;;  %256 = vmatpush.xpose.msk.msra.mxu1 %vm66_vm0, %v40_v1  ;;  %v42_v7 = vld [vmem:[%s534_s2] sm:$0xff]  ;;  %v44_v10 = vld [vmem:[%s534_s2 + $0x10] sm:$0xff]  ;;  %v33_v11 = vld [vmem:[%s532_s0 + $0x38] sm:$0xff] }
   0x7   :  { %257 = vmatpush.xpose.msk.msra.mxu2 %vm66_vm0, %v40_v1  ;;  %258 = vmatpush.xpose.msk.msra.mxu3 %vm66_vm0, %v40_v1  ;;  %v34_v9 = vld [vmem:[%s532_s0 + $0x40] sm:$0xff]  ;;  %v43_v12 = vld [vmem:[%s534_s2 + $0x8] sm:$0xff]  ;;  %v45_v13 = vld [vmem:[%s534_s2 + $0x18] sm:$0xff] }
   0x8   :  { %48 = vperm.xlu0 %303, %v42_v7   ;;  %305 = vset.pattern.permute.xlu2 %v342_v8  ;;  %v32_v14 = vld [vmem:[%s532_s0 + $0x30] sm:$0xff]  ;;  %v172_v15 = vld [vmem:[%s535_s3] sm:$0xff]  ;;  %v31_v17 = vld [vmem:[%s532_s0 + $0x28] sm:$0xff] }
   0x9   :  { %58 = vperm.xlu1 %304, %v44_v10   ;;  %178 = vperm.xlu2 %305, %v172_v15   ;;  %v174_v16 = vld [vmem:[%s535_s3 + $0x10] sm:$0xff]  ;;  %v175_v18 = vld [vmem:[%s535_s3 + $0x18] sm:$0xff]  ;;  %v173_v19 = vld [vmem:[%s535_s3 + $0x8] sm:$0xff] }
   0xa   :  { %235 = vmatpush.xpose.msk.msra.mxu0 %vm66_vm0, %v39_v2  ;;  %259 = vmatpush.xpose.msk.msra.mxu1 %vm66_vm0, %v39_v2  ;;  %v30_v20 = vld [vmem:[%s532_s0 + $0x20] sm:$0xff]  ;;  %v29_v21 = vld [vmem:[%s532_s0 + $0x18] sm:$0xff]  ;;  %v28_v22 = vld [vmem:[%s532_s0 + $0x10] sm:$0xff] }
   0xb   :  { %260 = vmatpush.xpose.msk.msra.mxu2 %vm66_vm0, %v39_v2  ;;  %261 = vmatpush.xpose.msk.msra.mxu3 %vm66_vm0, %v39_v2  ;;  %v27_v23 = vld [vmem:[%s532_s0 + $0x8] sm:$0xff]  ;;  %v26_v24 = vld [vmem:[%s532_s0] sm:$0xff]  ;;  %v24_v27 = vld [vmem:[%s533_s1 + $0x10] sm:$0xff] }
   0xc   :  { %v22_v25 = vld [vmem:[%s533_s1] sm:$0xff]  ;;  %v23_v26 = vld [vmem:[%s533_s1 + $0x8] sm:$0xff]  ;;  %v25_v28 = vld [vmem:[%s533_s1 + $0x18] sm:$0xff] }
   0xe   :  { %236 = vmatpush.xpose.msk.msra.mxu0 %vm66_vm0, %v38_v3  ;;  %262 = vmatpush.xpose.msk.msra.mxu1 %vm66_vm0, %v38_v3 }
   0xf   :  { %263 = vmatpush.xpose.msk.msra.mxu2 %vm66_vm0, %v38_v3  ;;  %264 = vmatpush.xpose.msk.msra.mxu3 %vm66_vm0, %v38_v3 }
  0x10   :  { %53 = vperm.xlu0 %303, %v43_v12  }
  0x11   :  { %63 = vperm.xlu1 %304, %v45_v13   ;;  %183 = vperm.xlu2 %305, %v173_v19  }
  0x12   :  { %237 = vmatpush.xpose.msk.msra.mxu0 %vm66_vm0, %v37_v4  ;;  %265 = vmatpush.xpose.msk.msra.mxu1 %vm66_vm0, %v37_v4 }
  0x13   :  { %266 = vmatpush.xpose.msk.msra.mxu2 %vm66_vm0, %v37_v4  ;;  %267 = vmatpush.xpose.msk.msra.mxu3 %vm66_vm0, %v37_v4 }
  0x16   :  { %238 = vmatpush.xpose.msk.msra.mxu0 %vm66_vm0, %v36_v5  ;;  %268 = vmatpush.xpose.msk.msra.mxu1 %vm66_vm0, %v36_v5 }
  0x17   :  { %269 = vmatpush.xpose.msk.msra.mxu2 %vm66_vm0, %v36_v5  ;;  %270 = vmatpush.xpose.msk.msra.mxu3 %vm66_vm0, %v36_v5 }
  0x18   :  { %188 = vperm.xlu0 %303, %v174_v16  }
  0x19   :  { %193 = vperm.xlu1 %304, %v175_v18  }
  0x1a   :  { %239 = vmatpush.xpose.msk.msra.mxu0 %vm66_vm0, %v35_v6  ;;  %271 = vmatpush.xpose.msk.msra.mxu1 %vm66_vm0, %v35_v6 }
  0x1b   :  { %272 = vmatpush.xpose.msk.msra.mxu2 %vm66_vm0, %v35_v6  ;;  %273 = vmatpush.xpose.msk.msra.mxu3 %vm66_vm0, %v35_v6 }
  0x1e   :  { %240 = vmatpush.xpose.msk.msra.mxu0 %vm66_vm0, %v34_v9  ;;  %274 = vmatpush.xpose.msk.msra.mxu1 %vm66_vm0, %v34_v9 }
  0x1f   :  { %275 = vmatpush.xpose.msk.msra.mxu2 %vm66_vm0, %v34_v9  ;;  %276 = vmatpush.xpose.msk.msra.mxu3 %vm66_vm0, %v34_v9  ;;  %v210_v9 = vstv %s536_s4 }
  0x22   :  { %241 = vmatpush.xpose.msk.msra.mxu0 %vm66_vm0, %v33_v11  ;;  %277 = vmatpush.xpose.msk.msra.mxu1 %vm66_vm0, %v33_v11 }
  0x23   :  { %278 = vmatpush.xpose.msk.msra.mxu2 %vm66_vm0, %v33_v11  ;;  %279 = vmatpush.xpose.msk.msra.mxu3 %vm66_vm0, %v33_v11 }
  0x26   :  { %242 = vmatpush.xpose.msk.msra.mxu0 %vm66_vm0, %v32_v14  ;;  %280 = vmatpush.xpose.msk.msra.mxu1 %vm66_vm0, %v32_v14 }
  0x27   :  { %281 = vmatpush.xpose.msk.msra.mxu2 %vm66_vm0, %v32_v14  ;;  %282 = vmatpush.xpose.msk.msra.mxu3 %vm66_vm0, %v32_v14 }
  0x2a   :  { %243 = vmatpush.xpose.msk.msra.mxu0 %vm66_vm0, %v31_v17  ;;  %283 = vmatpush.xpose.msk.msra.mxu1 %vm66_vm0, %v31_v17 }
  0x2b   :  { %284 = vmatpush.xpose.msk.msra.mxu2 %vm66_vm0, %v31_v17  ;;  %285 = vmatpush.xpose.msk.msra.mxu3 %vm66_vm0, %v31_v17 }
  0x2e   :  { %244 = vmatpush.xpose.msk.msra.mxu0 %vm66_vm0, %v30_v20  ;;  %286 = vmatpush.xpose.msk.msra.mxu1 %vm66_vm0, %v30_v20 }
  0x2f   :  { %287 = vmatpush.xpose.msk.msra.mxu2 %vm66_vm0, %v30_v20  ;;  %288 = vmatpush.xpose.msk.msra.mxu3 %vm66_vm0, %v30_v20 }
  0x32   :  { %245 = vmatpush.xpose.msk.msra.mxu0 %vm66_vm0, %v29_v21  ;;  %289 = vmatpush.xpose.msk.msra.mxu1 %vm66_vm0, %v29_v21 }
  0x33   :  { %290 = vmatpush.xpose.msk.msra.mxu2 %vm66_vm0, %v29_v21  ;;  %291 = vmatpush.xpose.msk.msra.mxu3 %vm66_vm0, %v29_v21 }
  0x36   :  { %246 = vmatpush.xpose.msk.msra.mxu0 %vm66_vm0, %v28_v22  ;;  %292 = vmatpush.xpose.msk.msra.mxu1 %vm66_vm0, %v28_v22 }
  0x37   :  { %293 = vmatpush.xpose.msk.msra.mxu2 %vm66_vm0, %v28_v22  ;;  %294 = vmatpush.xpose.msk.msra.mxu3 %vm66_vm0, %v28_v22 }
  0x3a   :  { %247 = vmatpush.xpose.msk.msra.mxu0 %vm66_vm0, %v27_v23  ;;  %295 = vmatpush.xpose.msk.msra.mxu1 %vm66_vm0, %v27_v23 }
  0x3b   :  { %296 = vmatpush.xpose.msk.msra.mxu2 %vm66_vm0, %v27_v23  ;;  %297 = vmatpush.xpose.msk.msra.mxu3 %vm66_vm0, %v27_v23 }
  0x3e   :  { %248 = vmatpush.xpose.msk.msra.mxu0 %vm66_vm0, %v26_v24  ;;  %298 = vmatpush.xpose.msk.msra.mxu1 %vm66_vm0, %v26_v24 }
  0x3f   :  { %299 = vmatpush.xpose.msk.msra.mxu2 %vm66_vm0, %v26_v24  ;;  %300 = vmatpush.xpose.msk.msra.mxu3 %vm66_vm0, %v26_v24 }
  0x41   :  { %249 = vmatmul.msk.f32.vlgmr.msra.gmra.mxu0 %vm66_vm0, %v22_v25  ;;  %250 = vmatmul.msk.f32.vlgmr.msra.gmra.mxu1 %vm66_vm0, %v23_v26 }
  0x42   :  { %251 = vmatmul.msk.f32.vlgmr.msra.gmra.mxu2 %vm66_vm0, %v24_v27  ;;  %252 = vmatmul.msk.f32.vlgmr.msra.gmra.mxu3 %vm66_vm0, %v25_v28 }
  0x63   :  { %v179_v41 = vpop.permute.xlu2 %178 }
  0x6b   :  { %v184_v53 = vpop.permute.xlu2 %183 }
  0x7a   :  { %v49_v29 = vpop.permute.xlu0 %48 }
  0x7b   :  { %v59_v30 = vpop.permute.xlu1 %58 }
  0x82   :  { %v54_v31 = vpop.permute.xlu0 %53 }
  0x83   :  { %v64_v38 = vpop.permute.xlu1 %63 }
  0x8a   :  { %v189_v60 = vpop.permute.xlu0 %188 }
  0x8b   :  { %v194_v0 = vpop.permute.xlu1 %193 }
  0xbe   :  { %v144_v32 = vpop.f32.mrf.mxu0  ;;  %v147_v33 = vpop.f32.mrf.mxu1 }
  0xbf   :  { %v145_v34 = vadd.f32 %v144_v32, %v49_v29  ;;  %v148_v35 = vadd.f32 %v147_v33, %v54_v31 }
  0xc1   :  { %v156_v36 = vmul.f32 0.5, %v145_v34  ;;  %v157_v37 = vmul.f32 0.5, %v148_v35 }
  0xc3   :  { %306 = vtanh.f32 %v156_v36 }
  0xc4   :  { %308 = vtanh.f32 %v157_v37 }
  0xc5   :  { %v150_v39 = vpop.f32.mrf.mxu2  ;;  %v153_v40 = vpop.f32.mrf.mxu3 }
  0xc6   :  { %v151_v42 = vadd.f32 %v150_v39, %v59_v30  ;;  %v154_v43 = vadd.f32 %v153_v40, %v64_v38 }
  0xc8   :  { %v158_v44 = vmul.f32 0.5, %v151_v42  ;;  %v159_v45 = vmul.f32 0.5, %v154_v43 }
  0xc9   :  { %v307_v46 = vpop.eup %306 }
  0xca   :  { %v309_v47 = vpop.eup %308  ;;  %v164_v48 = vmul.f32 0.5, %v307_v46  ;;  %310 = vtanh.f32 %v158_v44 }
  0xcb   :  { %312 = vtanh.f32 %v159_v45  ;;  %v165_v49 = vmul.f32 0.5, %v309_v47 }
  0xcc   :  { %v168_v50 = vadd.f32 0.5, %v164_v48 }
  0xcd   :  { %v169_v51 = vadd.f32 0.5, %v165_v49 }
  0xce   :  { %v196_v55 = vmul.f32 %v179_v41, %v168_v50 }
  0xcf   :  { %v197_v57 = vmul.f32 %v184_v53, %v169_v51 }
  0xd0   :  { %v311_v52 = vpop.eup %310 }
  0xd1   :  { %v313_v54 = vpop.eup %312  ;;  %v166_v56 = vmul.f32 0.5, %v311_v52  ;;  %v200_v63 = vadd.f32 %v197_v57, %v196_v55 }
  0xd2   :  { %v167_v58 = vmul.f32 0.5, %v313_v54 }
  0xd3   :  { %v170_v59 = vadd.f32 0.5, %v166_v56 }
  0xd4   :  { %v171_v61 = vadd.f32 0.5, %v167_v58 }
  0xd5   :  { %v198_v62 = vmul.f32 %v189_v60, %v170_v59 }
  0xd6   :  { %v199_v1 = vmul.f32 %v194_v0, %v171_v61 }
  0xd7   :  { %v201_v2 = vadd.f32 %v200_v63, %v198_v62 }
  0xd9   :  { %v202_v3 = vadd.f32 %v201_v2, %v199_v1 }
  0xdb   :  { %v203_v4 = vrot.slane %v202_v3, 4 }
  0xdd   :  { %v204_v5 = vadd.f32 %v203_v4, %v202_v3 }
  0xdf   :  { %v205_v6 = vrot.slane %v204_v5, 2 }
  0xe1   :  { %v206_v7 = vadd.f32 %v205_v6, %v204_v5 }
  0xe3   :  { %v207_v8 = vrot.slane %v206_v7, 1 }
  0xe5   :  { %v208_v10 = vadd.f32 %v207_v8, %v206_v7 }
  0xe7   :  { %v211_v11 = vadd.f32 %v210_v9, %v208_v10 }
  0xe9   :  { %v212_v12 = vmul.f32 0.5, %v211_v11 }
  0xeb   :  { %314 = vtanh.f32 %v212_v12 }
  0xf1   :  { %v315_v13 = vpop.eup %314 }
  0xf2   :  { %v214_v14 = vmul.f32 0.5, %v315_v13 }
  0xf4   :  { %v215_v15 = vadd.f32 0.5, %v214_v14 }
  0xf6   :  { %216 = vst [vmem:[#allocation3] sm:$0x1] %v215_v15 }
  0xf7   :  { %227 = dma.vmem_to_hbm [thread:$0]  %s223_s23, 16, %s225_s25, [#allocation4]  }
  0xf8   :  { %340 = dma.done.wait [#allocation4], 16  }
  0xf9   :  { %341 = vsyncadd [#allocation4], 4294967280 }
  0xfa   :  { %232 = vsyncpa [#allocation4], 1 }

</bundles_post_ra>
